<compile_context>
chip_gen: v6e
topology: v6e:2x2x1
jax: 0.10.0
libtpu: 0.0.40
codegen_flags: <defaults>
</compile_context>

<pallas_src>
import functools

import jax
import jax.numpy as jnp
from jax.experimental import pallas as pl
from jax.experimental.pallas import tpu as pltpu

CIN = 3       # conv input channels
COUT = 10     # conv output channels declared by the module (parameter shape)
CUSED = 3     # channels observable through split([1,1,1]) + cat
K = 3         # kernel size
CIN_PAD = 8   # input channels padded to a full sublane tile
CO_PAD = 8    # output channels padded to a full sublane tile


def _conv_kernel(x_ref, w_ref, b_ref, m_ref, o_ref, col_ref, *, W, lanes):
    # x_ref  : (CIN_PAD, lanes)            VMEM  (channels 3..7 are zero)
    # w_ref  : (CO_PAD, K*K*CIN_PAD)       VMEM  (8, 72) im2col weights
    # b_ref  : (CO_PAD, 1)                 VMEM
    # m_ref  : (K*K, lanes)                VMEM  constant {0,1} border masks
    # o_ref  : (CO_PAD, lanes)             VMEM  lane-dense output block
    # col_ref: (K*K*CIN_PAD, lanes)        VMEM  im2col scratch (72, lanes)
    xv = x_ref[...]
    # Build the im2col block: each tap is an XLU lane rotation of the
    # flattened input, border-masked, stored as an aligned 8-sublane slab.
    for kh in range(K):
        for kw in range(K):
            t = kh * K + kw
            s = (kh - 1) * W + (kw - 1)            # flat lane shift of this tap
            tap = xv if s == 0 else pltpu.roll(xv, shift=(-s) % lanes, axis=1)
            col_ref[pl.ds(t * CIN_PAD, CIN_PAD), :] = tap * m_ref[pl.ds(t, 1), :]
    # Single fused (8, 72) @ (72, lanes) contraction on the MXU + bias.
    o_ref[...] = jnp.dot(
        w_ref[...], col_ref[...],
        preferred_element_type=jnp.float32,
        precision=jax.lax.Precision.HIGHEST,
    ) + b_ref[...]


def conv3x3_p1_first3(x, w, b):
    """First 3 output channels of Conv2d(3, 10, 3, stride=1, padding=1)."""
    N, C, H, Wd = x.shape
    assert C == CIN
    HW = H * Wd

    # Step sizing: flatten (batch, H, W) onto the lane axis. Keep >= 2 grid
    # steps whenever there are >= 2 images so both v7x TensorCores get work
    # (on v5e/v6e the extra step is ~0.35 us); cap per-step lanes at 8192 so
    # blocks stay far below VMEM limits on every generation if scaled up.
    MAX_IMGS_PER_STEP = max(1, (32 * 256) // HW)
    if N <= 1 or HW % 128 != 0:
        imgs_per_step, num_steps = max(N, 1), 1
    else:
        imgs_per_step = min(max(1, (N + 1) // 2), MAX_IMGS_PER_STEP)
        num_steps = -(-N // imgs_per_step)
    N_pad = imgs_per_step * num_steps
    lanes = imgs_per_step * HW

    xp = x if N_pad == N else jnp.pad(x, ((0, N_pad - N), (0, 0), (0, 0), (0, 0)))
    # (N_pad, CIN, H, W) -> (CIN_PAD, N_pad*HW): lane-dense, channel-padded.
    x_flat = xp.reshape(N_pad, CIN, HW).transpose(1, 0, 2).reshape(CIN, N_pad * HW)
    x_flat = jnp.pad(x_flat.astype(jnp.float32), ((0, CIN_PAD - CIN), (0, 0)))

    # Weights: w_flat[co, t*CIN_PAD + ci] = w[co, ci, kh, kw], t = kh*K + kw.
    w_t = jnp.transpose(w[:CUSED], (0, 2, 3, 1)).reshape(CUSED, K * K, CIN)
    w_flat = jnp.zeros((CO_PAD, K * K, CIN_PAD), jnp.float32)
    w_flat = w_flat.at[:CUSED, :, :CIN].set(w_t.astype(jnp.float32))
    w_flat = w_flat.reshape(CO_PAD, K * K * CIN_PAD)
    b_col = jnp.zeros((CO_PAD, 1), jnp.float32).at[:CUSED, 0].set(
        b[:CUSED].astype(jnp.float32))

    # Constant {0,1} border masks (one row per tap), periodic per image.
    p = jnp.arange(HW)
    hh, ww = p // Wd, p % Wd
    rows = []
    for kh in range(K):
        for kw in range(K):
            dh, dw = kh - 1, kw - 1
            rows.append((hh + dh >= 0) & (hh + dh < H)
                        & (ww + dw >= 0) & (ww + dw < Wd))
    mask = jnp.stack(rows).astype(jnp.float32)       # (K*K, HW)
    mask = jnp.tile(mask, (1, imgs_per_step))        # (K*K, lanes)

    kernel = functools.partial(_conv_kernel, W=Wd, lanes=lanes)
    out_flat = pl.pallas_call(
        kernel,
        out_shape=jax.ShapeDtypeStruct((CO_PAD, N_pad * HW), jnp.float32),
        grid=(num_steps,),
        in_specs=[
            pl.BlockSpec((CIN_PAD, lanes), lambda i: (0, i)),
            pl.BlockSpec((CO_PAD, K * K * CIN_PAD), lambda i: (0, 0)),
            pl.BlockSpec((CO_PAD, 1), lambda i: (0, 0)),
            pl.BlockSpec((K * K, lanes), lambda i: (0, 0)),
        ],
        out_specs=pl.BlockSpec((CO_PAD, lanes), lambda i: (0, i)),
        scratch_shapes=[pltpu.VMEM((K * K * CIN_PAD, lanes), jnp.float32)],
        compiler_params=pltpu.CompilerParams(
            dimension_semantics=("parallel",)),
    )(x_flat, w_flat, b_col, mask)

    out = out_flat[:CUSED].reshape(CUSED, N_pad, HW).transpose(1, 0, 2)
    return out.reshape(N_pad, CUSED, H, Wd)[:N]


def model_forward(x, w, b):
    # Conv2d(3, 10, 3, 1, 1): only channels 0..2 are observable in the outputs,
    # so only those are computed. Dropout2d is the identity at inference time.
    # TODO(synk): torch.split(v1, [1, 1, 1], dim=1) on a 10-channel tensor raises
    # in PyTorch; we implement the intended 3-channel split/cat identity pattern,
    # i.e. cat(split) == v1[:, :3].
    v1_03 = conv3x3_p1_first3(x, w, b)          # (N, 3, H, W)
    concatenated = v1_03                        # split + cat is the identity
    split_tensors = tuple(concatenated[:, i:i + 1] for i in range(CUSED))
    return concatenated, split_tensors


if __name__ == "__main__":
    key = jax.random.PRNGKey(0)
    kx, kw, kb = jax.random.split(key, 3)

    # Small shapes consistent with the module (input channels = 3).
    N, H, W = 2, 16, 16
    x = jax.random.normal(kx, (N, CIN, H, W), dtype=jnp.float32)

    # Conv2d(3, 10, 3) parameters: weight (10, 3, 3, 3), bias (10,)
    fan_in = CIN * K * K
    bound = 1.0 / (fan_in ** 0.5)
    w = jax.random.uniform(kw, (COUT, CIN, K, K), jnp.float32, -bound, bound)
    b = jax.random.uniform(kb, (COUT,), jnp.float32, -bound, bound)

    concatenated, splits = model_forward(x, w, b)
    jax.block_until_ready(concatenated)
    for s in splits:
        jax.block_until_ready(s)

    # Shape checks + numerical check of the Pallas conv against an XLA reference.
    assert concatenated.shape == (N, CUSED, H, W)
    assert all(s.shape == (N, 1, H, W) for s in splits)
    ref = jax.lax.conv_general_dilated(
        x, w[:CUSED], window_strides=(1, 1), padding=((1, 1), (1, 1)),
        dimension_numbers=("NCHW", "OIHW", "NCHW"),
        precision=jax.lax.Precision.HIGHEST,
    ) + b[:CUSED].reshape(1, CUSED, 1, 1)
    max_err = float(jnp.max(jnp.abs(concatenated - ref)))
    assert max_err < 5e-3, f"kernel/XLA mismatch: max abs err = {max_err}"

    print("KERNEL_OK")
</pallas_src>

<mosaic_0001>
module attributes {stable_mosaic.version = 11 : i64} {
  func.func @_conv_kernel(%arg0: i32, %arg1: memref<8x256xf32, #tpu.memory_space<vmem>>, %arg2: memref<8x72xf32, #tpu.memory_space<vmem>>, %arg3: memref<8x1xf32, #tpu.memory_space<vmem>>, %arg4: memref<9x256xf32, #tpu.memory_space<vmem>>, %arg5: memref<8x256xf32, #tpu.memory_space<vmem>>, %arg6: memref<72x256xf32, #tpu.memory_space<vmem>>) attributes {dimension_semantics = [#tpu.dimension_semantics<parallel>], iteration_bounds = array<i64: 2>, scalar_prefetch = 0 : i64, scratch_operands = 1 : i64, tpu.core_type = #tpu.core_type<tc>, window_params = [{transform_indices = @transform_0, window_bounds = array<i64: 8, 256>}, {pipeline_mode = #tpu.pipeline_mode<synchronous>, transform_indices = @transform_1, window_bounds = array<i64: 8, 72>}, {pipeline_mode = #tpu.pipeline_mode<synchronous>, transform_indices = @transform_2, window_bounds = array<i64: 8, 1>}, {pipeline_mode = #tpu.pipeline_mode<synchronous>, transform_indices = @transform_3, window_bounds = array<i64: 9, 256>}, {transform_indices = @transform_4, window_bounds = array<i64: 8, 256>}]} {
    %c0 = arith.constant 0 : index
    %c0_0 = arith.constant 0 : index
    %0 = vector.load %arg1[%c0, %c0_0] : memref<8x256xf32, #tpu.memory_space<vmem>>, vector<8x256xf32>
    %c17_i32 = arith.constant 17 : i32
    %1 = tpu.dynamic_rotate %0 by %c17_i32 dim 1 : vector<8x256xf32>, i32 -> vector<8x256xf32>
    %c0_1 = arith.constant 0 : index
    %c0_2 = arith.constant 0 : index
    %2 = vector.load %arg4[%c0_1, %c0_2] : memref<9x256xf32, #tpu.memory_space<vmem>>, vector<1x256xf32>
    %3 = vector.broadcast %2 : vector<1x256xf32> to vector<8x256xf32>
    %4 = arith.mulf %1, %3 : vector<8x256xf32>
    %c0_3 = arith.constant 0 : index
    %c0_4 = arith.constant 0 : index
    %5 = vector.load %arg6[%c0_3, %c0_4] : memref<72x256xf32, #tpu.memory_space<vmem>>, vector<8x256xf32>
    tpu.vector_store %arg6[%c0_3, %c0_4], %4 {strides = array<i32>} : memref<72x256xf32, #tpu.memory_space<vmem>>, vector<8x256xf32>,
    %c16_i32 = arith.constant 16 : i32
    %6 = tpu.dynamic_rotate %0 by %c16_i32 dim 1 : vector<8x256xf32>, i32 -> vector<8x256xf32>
    %c1 = arith.constant 1 : index
    %c0_5 = arith.constant 0 : index
    %7 = vector.load %arg4[%c1, %c0_5] : memref<9x256xf32, #tpu.memory_space<vmem>>, vector<1x256xf32>
    %8 = vector.broadcast %7 : vector<1x256xf32> to vector<8x256xf32>
    %9 = arith.mulf %6, %8 : vector<8x256xf32>
    %c8 = arith.constant 8 : index
    %c0_6 = arith.constant 0 : index
    %10 = vector.load %arg6[%c8, %c0_6] : memref<72x256xf32, #tpu.memory_space<vmem>>, vector<8x256xf32>
    tpu.vector_store %arg6[%c8, %c0_6], %9 {strides = array<i32>} : memref<72x256xf32, #tpu.memory_space<vmem>>, vector<8x256xf32>,
    %c15_i32 = arith.constant 15 : i32
    %11 = tpu.dynamic_rotate %0 by %c15_i32 dim 1 : vector<8x256xf32>, i32 -> vector<8x256xf32>
    %c2 = arith.constant 2 : index
    %c0_7 = arith.constant 0 : index
    %12 = vector.load %arg4[%c2, %c0_7] : memref<9x256xf32, #tpu.memory_space<vmem>>, vector<1x256xf32>
    %13 = vector.broadcast %12 : vector<1x256xf32> to vector<8x256xf32>
    %14 = arith.mulf %11, %13 : vector<8x256xf32>
    %c16 = arith.constant 16 : index
    %c0_8 = arith.constant 0 : index
    %15 = vector.load %arg6[%c16, %c0_8] : memref<72x256xf32, #tpu.memory_space<vmem>>, vector<8x256xf32>
    tpu.vector_store %arg6[%c16, %c0_8], %14 {strides = array<i32>} : memref<72x256xf32, #tpu.memory_space<vmem>>, vector<8x256xf32>,
    %c1_i32 = arith.constant 1 : i32
    %16 = tpu.dynamic_rotate %0 by %c1_i32 dim 1 : vector<8x256xf32>, i32 -> vector<8x256xf32>
    %c3 = arith.constant 3 : index
    %c0_9 = arith.constant 0 : index
    %17 = vector.load %arg4[%c3, %c0_9] : memref<9x256xf32, #tpu.memory_space<vmem>>, vector<1x256xf32>
    %18 = vector.broadcast %17 : vector<1x256xf32> to vector<8x256xf32>
    %19 = arith.mulf %16, %18 : vector<8x256xf32>
    %c24 = arith.constant 24 : index
    %c0_10 = arith.constant 0 : index
    %20 = vector.load %arg6[%c24, %c0_10] : memref<72x256xf32, #tpu.memory_space<vmem>>, vector<8x256xf32>
    tpu.vector_store %arg6[%c24, %c0_10], %19 {strides = array<i32>} : memref<72x256xf32, #tpu.memory_space<vmem>>, vector<8x256xf32>,
    %c4 = arith.constant 4 : index
    %c0_11 = arith.constant 0 : index
    %21 = vector.load %arg4[%c4, %c0_11] : memref<9x256xf32, #tpu.memory_space<vmem>>, vector<1x256xf32>
    %22 = vector.broadcast %21 : vector<1x256xf32> to vector<8x256xf32>
    %23 = arith.mulf %0, %22 : vector<8x256xf32>
    %c32 = arith.constant 32 : index
    %c0_12 = arith.constant 0 : index
    %24 = vector.load %arg6[%c32, %c0_12] : memref<72x256xf32, #tpu.memory_space<vmem>>, vector<8x256xf32>
    tpu.vector_store %arg6[%c32, %c0_12], %23 {strides = array<i32>} : memref<72x256xf32, #tpu.memory_space<vmem>>, vector<8x256xf32>,
    %c255_i32 = arith.constant 255 : i32
    %25 = tpu.dynamic_rotate %0 by %c255_i32 dim 1 : vector<8x256xf32>, i32 -> vector<8x256xf32>
    %c5 = arith.constant 5 : index
    %c0_13 = arith.constant 0 : index
    %26 = vector.load %arg4[%c5, %c0_13] : memref<9x256xf32, #tpu.memory_space<vmem>>, vector<1x256xf32>
    %27 = vector.broadcast %26 : vector<1x256xf32> to vector<8x256xf32>
    %28 = arith.mulf %25, %27 : vector<8x256xf32>
    %c40 = arith.constant 40 : index
    %c0_14 = arith.constant 0 : index
    %29 = vector.load %arg6[%c40, %c0_14] : memref<72x256xf32, #tpu.memory_space<vmem>>, vector<8x256xf32>
    tpu.vector_store %arg6[%c40, %c0_14], %28 {strides = array<i32>} : memref<72x256xf32, #tpu.memory_space<vmem>>, vector<8x256xf32>,
    %c241_i32 = arith.constant 241 : i32
    %30 = tpu.dynamic_rotate %0 by %c241_i32 dim 1 : vector<8x256xf32>, i32 -> vector<8x256xf32>
    %c6 = arith.constant 6 : index
    %c0_15 = arith.constant 0 : index
    %31 = vector.load %arg4[%c6, %c0_15] : memref<9x256xf32, #tpu.memory_space<vmem>>, vector<1x256xf32>
    %32 = vector.broadcast %31 : vector<1x256xf32> to vector<8x256xf32>
    %33 = arith.mulf %30, %32 : vector<8x256xf32>
    %c48 = arith.constant 48 : index
    %c0_16 = arith.constant 0 : index
    %34 = vector.load %arg6[%c48, %c0_16] : memref<72x256xf32, #tpu.memory_space<vmem>>, vector<8x256xf32>
    tpu.vector_store %arg6[%c48, %c0_16], %33 {strides = array<i32>} : memref<72x256xf32, #tpu.memory_space<vmem>>, vector<8x256xf32>,
    %c240_i32 = arith.constant 240 : i32
    %35 = tpu.dynamic_rotate %0 by %c240_i32 dim 1 : vector<8x256xf32>, i32 -> vector<8x256xf32>
    %c7 = arith.constant 7 : index
    %c0_17 = arith.constant 0 : index
    %36 = vector.load %arg4[%c7, %c0_17] : memref<9x256xf32, #tpu.memory_space<vmem>>, vector<1x256xf32>
    %37 = vector.broadcast %36 : vector<1x256xf32> to vector<8x256xf32>
    %38 = arith.mulf %35, %37 : vector<8x256xf32>
    %c56 = arith.constant 56 : index
    %c0_18 = arith.constant 0 : index
    %39 = vector.load %arg6[%c56, %c0_18] : memref<72x256xf32, #tpu.memory_space<vmem>>, vector<8x256xf32>
    tpu.vector_store %arg6[%c56, %c0_18], %38 {strides = array<i32>} : memref<72x256xf32, #tpu.memory_space<vmem>>, vector<8x256xf32>,
    %c239_i32 = arith.constant 239 : i32
    %40 = tpu.dynamic_rotate %0 by %c239_i32 dim 1 : vector<8x256xf32>, i32 -> vector<8x256xf32>
    %c8_19 = arith.constant 8 : index
    %c0_20 = arith.constant 0 : index
    %41 = vector.load %arg4[%c8_19, %c0_20] : memref<9x256xf32, #tpu.memory_space<vmem>>, vector<1x256xf32>
    %42 = vector.broadcast %41 : vector<1x256xf32> to vector<8x256xf32>
    %43 = arith.mulf %40, %42 : vector<8x256xf32>
    %c64 = arith.constant 64 : index
    %c0_21 = arith.constant 0 : index
    %44 = vector.load %arg6[%c64, %c0_21] : memref<72x256xf32, #tpu.memory_space<vmem>>, vector<8x256xf32>
    tpu.vector_store %arg6[%c64, %c0_21], %43 {strides = array<i32>} : memref<72x256xf32, #tpu.memory_space<vmem>>, vector<8x256xf32>,
    %c0_22 = arith.constant 0 : index
    %c0_23 = arith.constant 0 : index
    %45 = vector.load %arg2[%c0_22, %c0_23] : memref<8x72xf32, #tpu.memory_space<vmem>>, vector<8x72xf32>
    %c0_24 = arith.constant 0 : index
    %c0_25 = arith.constant 0 : index
    %46 = vector.load %arg6[%c0_24, %c0_25] : memref<72x256xf32, #tpu.memory_space<vmem>>, vector<72x256xf32>
    %cst = arith.constant dense<0.000000e+00> : vector<8x256xf32>
    %47 = tpu.matmul %45, %46, %cst {dimension_numbers = #tpu.dot_dimension_numbers<[1], [0], [0], [1], [0, 0, 1, 1], [], []>, precision = #tpu.contract_precision<fp32>} : vector<8x72xf32>, vector<72x256xf32>, vector<8x256xf32> -> vector<8x256xf32>
    %c0_26 = arith.constant 0 : index
    %c0_27 = arith.constant 0 : index
    %48 = vector.load %arg3[%c0_26, %c0_27] : memref<8x1xf32, #tpu.memory_space<vmem>>, vector<8x1xf32>
    %49 = vector.broadcast %48 : vector<8x1xf32> to vector<8x256xf32>
    %50 = arith.addf %47, %49 : vector<8x256xf32>
    %c0_28 = arith.constant 0 : index
    %c0_29 = arith.constant 0 : index
    %51 = vector.load %arg5[%c0_28, %c0_29] : memref<8x256xf32, #tpu.memory_space<vmem>>, vector<8x256xf32>
    tpu.vector_store %arg5[%c0_28, %c0_29], %50 {strides = array<i32>} : memref<8x256xf32, #tpu.memory_space<vmem>>, vector<8x256xf32>,
    return
  }
  func.func @transform_0(%arg0: i32) -> (i32, i32) {
    %c0_i32 = arith.constant 0 : i32
    %c0_i32_0 = arith.constant 0 : i32
    return %c0_i32, %arg0 : i32, i32
  }
  func.func @transform_1(%arg0: i32) -> (i32, i32) {
    %c0_i32 = arith.constant 0 : i32
    %c0_i32_0 = arith.constant 0 : i32
    %c0_i32_1 = arith.constant 0 : i32
    return %c0_i32, %c0_i32_0 : i32, i32
  }
  func.func @transform_2(%arg0: i32) -> (i32, i32) {
    %c0_i32 = arith.constant 0 : i32
    %c0_i32_0 = arith.constant 0 : i32
    %c0_i32_1 = arith.constant 0 : i32
    return %c0_i32, %c0_i32_0 : i32, i32
  }
  func.func @transform_3(%arg0: i32) -> (i32, i32) {
    %c0_i32 = arith.constant 0 : i32
    %c0_i32_0 = arith.constant 0 : i32
    %c0_i32_1 = arith.constant 0 : i32
    return %c0_i32, %c0_i32_0 : i32, i32
  }
  func.func @transform_4(%arg0: i32) -> (i32, i32) {
    %c0_i32 = arith.constant 0 : i32
    %c0_i32_0 = arith.constant 0 : i32
    return %c0_i32, %arg0 : i32, i32
  }
}

</mosaic_0001>

<bundles_post_ra>
// kernel: tpu_custom_call.1
= control target key start
LH: loop header
LB: loop body
LE: loop exit
PB: predicated region body
PF: predicated region fallthrough
CT: control target
= control target key end

     0   :  { %9 = vsyncpa [#allocation4], 0  ;;  %s2071_s0 = inlined_call_operand.hbm [shape: f32[8,512], index: 0, kind: input, shape index: {}]   ;;  %s2072_s1 = inlined_call_operand.vmem [shape: f32[8,72], index: 1, kind: input, shape index: {}]   ;;  %s2073_s2 = inlined_call_operand.vmem [shape: f32[8,1], index: 2, kind: input, shape index: {}]   ;;  %s2074_s3 = inlined_call_operand.hbm [shape: f32[9,256], index: 3, kind: input, shape index: {}]   ;;  %s2075_s4 = inlined_call_operand.hbm [shape: f32[8,512], index: 4, kind: output, shape index: {}]  }
   0x1   :  { %11 = vsyncpa [#allocation4 + $0x1], 0 }
   0x2   :  { %12 = vsyncpa [#allocation7], 0 }
   0x3   :  { %13 = vsyncpa [#allocation5], 0 }
   0x4   :  { %15 = vsyncpa [#allocation5 + $0x1], 0  ;;  %s1494_s15 = smov 0   ;;  %s1496_s16 = smov 0  }
   0x5   :  { %s1498_s17 = smov 0   ;;  %s1500_s18 = smov 0  }
   0x6 LB: > { %s1515_s19 = sadd.s32 4294967295, %s1452_s18   ;;  %s1242_s20 = sadd.s32 4294967294, %s1452_s18   ;;  %s1452_s18 = sphi %s1500_s18, %s2113_s18   ;;  %s1448_s17 = sphi %s1498_s17, %s2112_s17   ;;  %s1444_s16 = sphi %s1496_s16, %s2111_s16   ;;  %s1440_s15 = sphi %s1494_s15, %s2110_s15  }
   0x7   : > { %p41_p0 = scmp.ne.s32.totalorder %s1444_s16, %s1440_s15  ;;  %p2076_p1 = scmp.eq.s32.totalorder %s1515_s19, 0 }
   0x8   : > { %p134_p3 = scmp.eq.s32.totalorder %s1242_s20, 1  ;;  %p1243_p5 = scmp.ge.s32.totalorder %s1452_s18, 1 }
   0x9   : > { %p1524_p4 = por %p2076_p1, %p41_p0  ;;  %p141_p7 = scmp.lt.s32.totalorder %s1452_s18, 3 }
   0xa   : > { %p1529_p6 = por %p134_p3, %p41_p0  ;;  %s1454_s24 = smov [#allocation6]  }
   0xb   : > { %s2088_s21 = scalar_select %p1524_p4, 1, 0 }
   0xc   : > { %s2089_s22 = scalar_select %p1529_p6, 1, 0 }
   0xd   : > { %p1534_p8 = pnand %p1243_p5, %p141_p7  ;;  %s159_s25 = sshll.u32 %s1454_s24, 4  ;;  %s160_s25 = int_to_ptr.vmem [resolvable:$true] %s159_s25 }
   0xe   : > { %s1548_s27 = sadd.s32 1, %s1452_s18   ;;  %s28_s28 = sadd.s32 1, %s1448_s17 }
   0xf   : > { %s2090_s23 = scalar_select %p1534_p8, 1, 0 }
  0x10   : > { %p1268_p9 = pneg %p1534_p8  ;;  %s25_s29 = ssub.s32 %s1452_s18, %s1548_s27 }
  0x11   : > { %s1341_s30 = scalar_lea.vmem %s160_s25, 512  ;;  %p1349_p5 = scmp.lt.s32.totalorder %s160_s25, %s160_s25 }
  0x12   : > { %p1543_p11 = pnand %p1268_p9, %p2076_p1  ;;  %p1342_p13 = scmp.ne.s32.totalorder %s160_s25, %s1341_s30 }
  0x13   : > { %p1350_p7 = scmp.lt.s32.totalorder %s1341_s30, %s1341_s30 }
  0x14   : > { %p1332_p12 = pneg %p1543_p11 }
  0x15   : > { %p1351_p10 = por %p1350_p7, %p1349_p5 }
  0x16   : > { %p1344_p0 = pnand %p1342_p13, %p1332_p12 }
  0x18   : > { %p1345_p3 = pneg %p1344_p0 }
  0x1a   : > { %p1352_p2 = pnand %p1351_p10, %p1345_p3 }
  0x1c   : > { %1355 = shalt.err (!%p1352_p2)
}
  0x1d   : > { %s1455_s5 = smov 256   ;;  %s1456_s6 = smov 16  }
  0x1e   : > { %1271 = dma.hbm_to_vmem [thread:$0]  (!%p1543_p11), %s2074_s3, 512, %s160_s25, [#allocation7], %s1455_s5, %s1455_s5, %s1456_s6  }
  0x1f   : > { %p26_p9 = scmp.eq.s32.totalorder %s25_s29, 0  ;;  %p35_p12 = scmp.ne.s32.totalorder %s1448_s17, %s1444_s16 }
  0x20   : > { %p36_p10 = scmp.eq.s32.totalorder %s1452_s18, 0  ;;  %p1281_p2 = scmp.lt.s32.totalorder %s1452_s18, 2 }
  0x21   : > { %s1565_s9 = scalar_select %p26_p9, %s1448_s17, %s28_s28  }
  0x22   : > { %p37_p13 = por %p36_p10, %p35_p12  ;;  %p2092_p0 = scmp.eq.s32.totalorder %s1515_s19, 1 }
  0x23   : > { %s173_s11 = sand.u32 1, %s1448_s17   ;;  %s1258_s12 = sshll.u32 %s1452_s18, 8 }
  0x24   : > { %p1569_p3 = por %p2092_p0, %p35_p12  ;;  %s1246_s13 = sshll.u32 %s173_s11, 4 }
  0x25   : > { %s1578_s24 = scalar_lea.hbm %s2071_s0, %s1258_s12  ;;  %s177_s25 = scalar_lea.vmem [#allocation3], %s1246_s13 }
  0x26   : > { %s2093_s10 = scalar_select %p1569_p3, 1, 0 }
  0x27   : > { %s185_s26 = sshll.u32 %s177_s25, 4  ;;  %p1580_p11 = pnand %p1281_p2, %p37_p13  ;;  %s186_s26 = int_to_ptr.vmem [resolvable:$true] %s185_s26 }
  0x28   : > { %s174_s29 = scalar_lea.sflag [#allocation4], %s173_s11  ;;  %s1356_s30 = scalar_lea.hbm %s1578_s24, 256 }
  0x29   : > { %p1357_p5 = scmp.ne.s32.totalorder %s1578_s24, %s1356_s30  ;;  %p1358_p7 = pneg %p1580_p11 }
  0x2a   : > { %s1361_s7 = scalar_lea.hbm %s2071_s0, 512  ;;  %p1362_p10 = scmp.lt.s32.totalorder %s1578_s24, %s2071_s0 }
  0x2b   : > { %p1359_p9 = pnand %p1358_p7, %p1357_p5  ;;  %p1363_p2 = scmp.lt.s32.totalorder %s1361_s7, %s1356_s30 }
  0x2d   : > { %p1360_p12 = pneg %p1359_p9  ;;  %p1364_p13 = por %p1363_p2, %p1362_p10 }
  0x2f   : > { %p1365_p0 = pnand %p1364_p13, %p1360_p12 }
  0x31   : > { %1368 = shalt.err (!%p1365_p0)
}
  0x32   : > { %s1369_s13 = scalar_lea.vmem %s186_s26, 256  ;;  %s1457_s11 = smov [#allocation3]  }
  0x33   : > { %p1370_p1 = scmp.ne.s32.totalorder %s186_s26, %s1369_s13  ;;  %s1374_s14 = sshll.u32 %s1457_s11, 4  ;;  %s1375_s14 = int_to_ptr.vmem [resolvable:$false] %s1374_s14 }
  0x34   : > { %s1376_s20 = scalar_lea.vmem %s1375_s14, 512  ;;  %p1377_p5 = scmp.lt.s32.totalorder %s186_s26, %s1375_s14 }
  0x35   : > { %p1372_p6 = pnand %p1370_p1, %p1358_p7  ;;  %p1378_p9 = scmp.lt.s32.totalorder %s1376_s20, %s1369_s13 }
  0x37   : > { %p1373_p3 = pneg %p1372_p6  ;;  %p1379_p4 = por %p1378_p9, %p1377_p5 }
  0x39   : > { %p1380_p8 = pnand %p1379_p4, %p1373_p3 }
  0x3b   : > { %1383 = shalt.err (!%p1380_p8)
}
  0x3c   : > { %1275 = dma.hbm_to_vmem [thread:$0]  (!%p1580_p11), %s1578_s24, 256, %s186_s26, %s174_s29  }
  0x3d   : > { %p2095_p12 = scmp.ne.s32.totalorder %s2090_s23, 0 }
  0x3e   : > { %s1601_s25 = sand.u32 (!%p2095_p12), 1, %s1444_s16   ;;  %p2096_p1 = scmp.ne.s32.totalorder (!%p2095_p12), %s2088_s21, 0 }
  0x3f   : > { %194 = sbr.rel (%p2095_p12) target bundleno = 480 (0x1e0), region = 36  ;;  %s1250_s30 = sshll.u32 (!%p2095_p12), %s1601_s25, 4 }
  0x40   : > { %s197_s5 = scalar_lea.sflag (!%p2095_p12), [#allocation4], %s1601_s25  ;;  %s200_s6 = scalar_lea.vmem (!%p2095_p12), [#allocation3], %s1250_s30 }
  0x44   : > { %1427 = dma.done.wait (%p2096_p1), %s197_s5, 256  }
  0x45   : > { %1429 = vsyncadd (%p2096_p1), %s197_s5, 4294967040  ;;  %p2097_p4 = scmp.eq.s32.totalorder %s1515_s19, 0 }
  0x47   : > { %1431 = dma.done.wait (%p2097_p4), [#allocation7], 512   ;;  %p2098_p6 = pmov %p2097_p4 }
  0x48   : > { %v231_v0 = vld [vmem:[%s200_s6] sm:$0xff]  ;;  %s1458_s23 = smov 112   ;;  %s1459_s24 = smov 111   ;;  %v232_v1 = vld [vmem:[%s200_s6 + $0x8] sm:$0xff]  ;;  %v1464_v2 = vmov 0.0   ;;  %v1467_v4 = vmov 0   ;;  %v237_v5 = vlaneseq }
  0x49   : > { %1433 = vsyncadd (%p2098_p6), [#allocation7], 4294966784  ;;  %395 = vrot.lane.b32.xlu1 %v231_v0, %s1458_s23  ;;  %419 = vrot.lane.b32.xlu0 %v231_v0, %s1459_s24  ;;  %s1460_s26 = smov 113   ;;  %s1461_s28 = smov 127   ;;  %v462_v3 = vld [vmem:[%s2073_s2] sm:$0xff]  ;;  %vm468_vm4 = vcmask 588800  }
  0x4a   : > { %s1462_s21 = smov 1   ;;  %s1463_s29 = smov 15   ;;  %554 = vmatprep.mubr.f32.mxu0 %v1464_v2  ;;  %720 = vmatprep.mubr.f32.mxu1 %v1464_v2  ;;  %v245_v6 = vshrl.u32 %v237_v5, 7  ;;  %v331_v7 = vld [vmem:[#allocation6 + $0x4] ss:$8 sm:$0x3] }
  0x4b   : > { %s1465_s7 = smov 16   ;;  %s1466_s8 = smov 17   ;;  %1329 = vset.pattern.permute.xlu0 %v1467_v4  ;;  %v1630_v16 = vand.u32 127, %v237_v5  ;;  %v403_v18 = vld [vmem:[#allocation6 + $0x7] ss:$8 sm:$0x3] }
  0x4c   : > { %v1620_v8 = vsub.s32 1, %v245_v6  ;;  %v1623_v10 = vsub.s32 0, %v245_v6  ;;  %v427_v19 = vld [vmem:[#allocation6 + $0x10] ss:$8 sm:$0x3]  ;;  %v443_v45 = vld [vmem:[%s2072_s1] sm:$0xff] }
  0x4d   : > { %397 = vrot.lane.b32.xlu1 %v232_v1, %s1458_s23  ;;  %421 = vrot.lane.b32.xlu0 %v232_v1, %s1459_s24  ;;  %v1635_v20 = vld [vmem:[#allocation6 + $0x6] ss:$8 sm:$0x3]  ;;  %v1637_v21 = vld [vmem:[#allocation6 + $0x5] ss:$8 sm:$0x3] }
  0x4e   : > { %v340_v9 = vrot.slane %v331_v7, %v1620_v8  ;;  %v336_v11 = vrot.slane %v331_v7, %v1623_v10  ;;  %vm399_vm0 = vcmp.lt.s32.totalorder %v1630_v16, 112  ;;  %vm423_vm1 = vcmp.lt.s32.totalorder %v1630_v16, 111  ;;  %v1644_v25 = vld [vmem:[#allocation6 + $0x3] ss:$8 sm:$0x3]  ;;  %s1259_s20 = sshll.u32 %s1515_s19, 8 }
  0x4f   : > { %v408_v27 = vrot.slane %v403_v18, %v1623_v10  ;;  %v412_v28 = vrot.slane %v403_v18, %v1620_v8  ;;  %v432_v29 = vrot.slane %v427_v19, %v1623_v10  ;;  %vm375_vm2 = vcmp.lt.s32.totalorder %v1630_v16, 113  ;;  %v1651_v30 = vld [vmem:[#allocation6 + $0x2] ss:$8 sm:$0x3]  ;;  %s228_s5 = scalar_lea.vmem [#allocation8], %s1250_s30  ;;  %p2107_p3 = scmp.ne.s32.totalorder %s2093_s10, 0 }
  0x50   : > { %v344_v12 = vmul.f32 %v340_v9, %v232_v1  ;;  %v343_v13 = vmul.f32 %v336_v11, %v231_v0  ;;  %v436_v31 = vrot.slane %v427_v19, %v1620_v8  ;;  %v384_v32 = vrot.slane %v1635_v20, %v1623_v10  ;;  %v1672_v43 = vld [vmem:[#allocation6 + $0x1] ss:$8 sm:$0x3]  ;;  %v1691_v54 = vld [vmem:[#allocation6] ss:$8 sm:$0x3] }
  0x51   : > { %373 = vrot.lane.b32.xlu1 %v232_v1, %s1460_s26  ;;  %371 = vrot.lane.b32.xlu0 %v231_v0, %s1460_s26  ;;  %v388_v33 = vrot.slane %v1635_v20, %v1620_v8  ;;  %vm351_vm3 = vcmp.lt.s32.totalorder %v1630_v16, 127  ;;  %v360_v34 = vrot.slane %v1637_v21, %v1623_v10  ;;  %v364_v35 = vrot.slane %v1637_v21, %v1620_v8  ;;  %s1162_s6 = sshll.u32 %s228_s5, 4  ;;  %s1160_s26 = scalar_lea.hbm %s2075_s4, %s1259_s20  ;;  %s1163_s6 = int_to_ptr.vmem [resolvable:$true] %s1162_s6 }
  0x52   : > { %v1626_v14 = vand.u32 4294901760, %v344_v12  ;;  %v1628_v15 = vand.u32 4294901760, %v343_v13  ;;  %v319_v36 = vrot.slane %v1644_v25, %v1623_v10  ;;  %v323_v37 = vrot.slane %v1644_v25, %v1620_v8  ;;  %s1468_s19 = smov [#allocation8]  }
  0x53   : > { %v295_v41 = vrot.slane %v1651_v30, %v1623_v10  ;;  %v299_v42 = vrot.slane %v1651_v30, %v1620_v8  ;;  %vm310_vm5 = vcmp.lt.s32.totalorder %v1630_v16, 1  ;;  %v271_v55 = vrot.slane %v1672_v43, %v1623_v10  ;;  %s1388_s30 = sshll.u32 %s1468_s19, 4  ;;  %s1389_s30 = int_to_ptr.vmem [resolvable:$false] %s1388_s30 }
  0x54   : > { %v1633_v17 = vsub.f32 %v344_v12, %v1626_v14  ;;  %v1640_v22 = vsub.f32 %v343_v13, %v1628_v15  ;;  %v275_v56 = vrot.slane %v1672_v43, %v1620_v8  ;;  %v470_v58 = vsel %vm468_vm4, %v443_v45, 0  ;;  %p1391_p10 = scmp.lt.s32.totalorder %s1163_s6, %s1389_s30 }
  0x55   : > { %349 = vrot.lane.b32.xlu1 %v232_v1, %s1461_s28  ;;  %347 = vrot.lane.b32.xlu0 %v231_v0, %s1461_s28  ;;  %v247_v5 = vrot.slane %v1691_v54, %v1623_v10  ;;  %vm286_vm6 = vcmp.lt.s32.totalorder %v1630_v16, 15  ;;  %v251_v18 = vrot.slane %v1691_v54, %v1620_v8  ;;  %v1734_v19 = vand.u32 4294901760, %v470_v58  ;;  %s1148_s28 = scalar_lea.sflag [#allocation5], %s1601_s25 }
  0x56   : > { %v2081_v26 = vand.u32 4294901760, %v1633_v17  ;;  %v2080_v38 = vand.u32 4294901760, %v1640_v22  ;;  %vm262_vm7 = vcmp.lt.s32.totalorder %v1630_v16, 16  ;;  %vm239_vm8 = vcmp.lt.s32.totalorder %v1630_v16, 17 }
  0x58   : > { %v1677_v44 = vsub.f32 %v1633_v17, %v2081_v26  ;;  %v1700_v57 = vsub.f32 %v1640_v22, %v2080_v38 }
  0x59   : > { %308 = vrot.lane.b32.xlu1 %v232_v1, %s1462_s21  ;;  %306 = vrot.lane.b32.xlu0 %v231_v0, %s1462_s21  ;;  %s1384_s21 = scalar_lea.vmem %s1163_s6, 256 }
  0x5a   : > { %v632_v4 = vand.u32 4294901760, %v1677_v44  ;;  %p1385_p8 = scmp.ne.s32.totalorder %s1163_s6, %s1384_s21 }
  0x5c   : > { %p1386_p11 = pnand %p1385_p8, %p2107_p3 }
  0x5d   : > { %284 = vrot.lane.b32.xlu1 %v232_v1, %s1463_s29  ;;  %282 = vrot.lane.b32.xlu0 %v231_v0, %s1463_s29  ;;  %s1390_s29 = scalar_lea.vmem %s1389_s30, 512 }
  0x5e   : > { %p1387_p7 = pneg %p1386_p11  ;;  %p1392_p2 = scmp.lt.s32.totalorder %s1390_s29, %s1384_s21 }
  0x60   : > { %p1393_p13 = por %p1392_p2, %p1391_p10 }
  0x61   : > { %260 = vrot.lane.b32.xlu1 %v232_v1, %s1465_s7  ;;  %258 = vrot.lane.b32.xlu0 %v231_v0, %s1465_s7 }
  0x62   : > { %p1394_p0 = pnand %p1393_p13, %p1387_p7 }
  0x65   : > { %235 = vrot.lane.b32.xlu1 %v232_v1, %s1466_s8  ;;  %233 = vrot.lane.b32.xlu0 %v231_v0, %s1466_s8 }
  0x69   : > { %465 = vperm.xlu0 %1329, %v462_v3  }
  0xbb   : > { %v396_v23 = vpop.permute.xlu1 %395  ;;  %v420_v24 = vpop.permute.xlu0 %419 }
  0xbf   : > { %v398_v39 = vpop.permute.xlu1 %397  ;;  %v422_v40 = vpop.permute.xlu0 %421 }
  0xc0   : > { %v400_v46 = vsel %vm399_vm0, %v396_v23, %v398_v39  ;;  %v401_v47 = vsel %vm399_vm0, %v398_v39, %v396_v23  ;;  %v424_v48 = vsel %vm423_vm1, %v420_v24, %v422_v40  ;;  %v425_v49 = vsel %vm423_vm1, %v422_v40, %v420_v24 }
  0xc1   : > { %v415_v50 = vmul.f32 %v408_v27, %v400_v46  ;;  %v416_v51 = vmul.f32 %v412_v28, %v401_v47  ;;  %v439_v52 = vmul.f32 %v432_v29, %v424_v48  ;;  %v440_v53 = vmul.f32 %v436_v31, %v425_v49 }
  0xc3   : > { %v1702_v59 = vand.u32 4294901760, %v416_v51  ;;  %v1704_v60 = vand.u32 4294901760, %v415_v50  ;;  %v1706_v61 = vand.u32 4294901760, %v440_v53  ;;  %v1708_v62 = vand.u32 4294901760, %v439_v52  ;;  %v374_v63 = vpop.permute.xlu1 %373  ;;  %v372_v0 = vpop.permute.xlu0 %371 }
  0xc4   : > { %v376_v1 = vsel %vm375_vm2, %v372_v0, %v374_v63  ;;  %v377_v3 = vsel %vm375_vm2, %v374_v63, %v372_v0 }
  0xc5   : > { %v1718_v6 = vsub.f32 %v416_v51, %v1702_v59  ;;  %v1721_v7 = vsub.f32 %v415_v50, %v1704_v60  ;;  %v1724_v9 = vsub.f32 %v440_v53, %v1706_v61  ;;  %v1727_v11 = vsub.f32 %v439_v52, %v1708_v62  ;;  %487 = vmatprep.subr.mxu0 %v1706_v61 }
  0xc6   : > { %v391_v12 = vmul.f32 %v384_v32, %v376_v1  ;;  %v392_v13 = vmul.f32 %v388_v33, %v377_v3  ;;  %489 = vmatpush1.msra.mxu0 %v1708_v62  ;;  %v638_v3 = vand.u32 4294901760, %v1700_v57 }
  0xc7   : > { %v350_v20 = vpop.permute.xlu1 %349  ;;  %491 = vmatprep.subr.mxu0 %v1702_v59  ;;  %v348_v21 = vpop.permute.xlu0 %347  ;;  %v582_v23 = vand.u32 4294901760, %v1724_v9  ;;  %v588_v24 = vand.u32 4294901760, %v1727_v11  ;;  %v594_v27 = vand.u32 4294901760, %v1718_v6  ;;  %v600_v28 = vand.u32 4294901760, %v1721_v7 }
  0xc8   : > { %v1741_v29 = vand.u32 4294901760, %v392_v13  ;;  %v1743_v31 = vand.u32 4294901760, %v391_v12  ;;  %v352_v32 = vsel %vm351_vm3, %v348_v21, %v350_v20  ;;  %v353_v33 = vsel %vm351_vm3, %v350_v20, %v348_v21  ;;  %493 = vmatpush1.msra.mxu0 %v1704_v60 }
  0xc9   : > { %v367_v39 = vmul.f32 %v360_v34, %v352_v32  ;;  %v368_v40 = vmul.f32 %v364_v35, %v353_v33  ;;  %v583_v45 = vsub.f32 %v1724_v9, %v582_v23  ;;  %v589_v46 = vsub.f32 %v1727_v11, %v588_v24 }
  0xca   : > { %v1758_v47 = vsub.f32 %v392_v13, %v1741_v29  ;;  %v1761_v48 = vsub.f32 %v391_v12, %v1743_v31  ;;  %495 = vmatprep.subr.mxu0 %v1741_v29  ;;  %v595_v34 = vsub.f32 %v1718_v6, %v594_v27  ;;  %v601_v35 = vsub.f32 %v1721_v7, %v600_v28 }
  0xcb   : > { %v1770_v49 = vand.u32 4294901760, %v368_v40  ;;  %v1772_v50 = vand.u32 4294901760, %v367_v39  ;;  %497 = vmatpush1.msra.mxu0 %v1743_v31  ;;  %v309_v51 = vpop.permute.xlu1 %308  ;;  %v307_v52 = vpop.permute.xlu0 %306  ;;  %v584_v53 = vand.u32 4294901760, %v583_v45  ;;  %v590_v63 = vand.u32 4294901760, %v589_v46 }
  0xcc   : > { %v311_v0 = vsel %vm310_vm5, %v307_v52, %v309_v51  ;;  %v312_v1 = vsel %vm310_vm5, %v309_v51, %v307_v52  ;;  %v1781_v12 = vsub.f32 %v470_v58, %v1734_v19  ;;  %v596_v58 = vand.u32 4294901760, %v595_v34 }
  0xcd   : > { %v1784_v13 = vsub.f32 %v368_v40, %v1770_v49  ;;  %v1787_v20 = vsub.f32 %v367_v39, %v1772_v50  ;;  %v326_v21 = vmul.f32 %v319_v36, %v312_v1  ;;  %v327_v32 = vmul.f32 %v323_v37, %v311_v0  ;;  %499 = vmatprep.subr.mxu0 %v1770_v49 }
  0xce   : > { %585 = vmatprep.subr.mxu1 %v584_v53  ;;  %501 = vmatpush1.msra.mxu0 %v1772_v50  ;;  %v602_v33 = vand.u32 4294901760, %v601_v35  ;;  %v2085_v39 = vand.u32 4294901760, %v1758_v47  ;;  %v2084_v40 = vand.u32 4294901760, %v1761_v48  ;;  %v557_v53 = vand.u32 4294901760, %v1781_v12 }
  0xcf   : > { %v1800_v45 = vand.u32 4294901760, %v327_v32  ;;  %v1802_v36 = vand.u32 4294901760, %v326_v21  ;;  %591 = vmatpush1.msra.mxu1 %v590_v63  ;;  %v285_v25 = vpop.permute.xlu1 %284  ;;  %503 = vmatprep.subr.mxu0 %v1626_v14  ;;  %v283_v37 = vpop.permute.xlu0 %282  ;;  %v2083_v46 = vand.u32 4294901760, %v1784_v13  ;;  %v2082_v51 = vand.u32 4294901760, %v1787_v20 }
  0xd0   : > { %597 = vmatprep.subr.mxu1 %v596_v58  ;;  %v287_v34 = vsel %vm286_vm6, %v283_v37, %v285_v25  ;;  %v288_v35 = vsel %vm286_vm6, %v285_v25, %v283_v37  ;;  %505 = vmatpush1.msra.mxu0 %v1628_v15  ;;  %v607_v52 = vsub.f32 %v1758_v47, %v2085_v39 }
  0xd1   : > { %v1817_v63 = vsub.f32 %v327_v32, %v1800_v45  ;;  %v1820_v0 = vsub.f32 %v326_v21, %v1802_v36  ;;  %v302_v1 = vmul.f32 %v295_v41, %v288_v35  ;;  %v303_v58 = vmul.f32 %v299_v42, %v287_v34  ;;  %603 = vmatpush1.msra.mxu1 %v602_v33 }
  0xd2   : > { %507 = vmatprep.subr.mxu0 %v1800_v45  ;;  %v608_v25 = vand.u32 4294901760, %v607_v52  ;;  %v613_v32 = vsub.f32 %v1761_v48, %v2084_v40  ;;  %v619_v21 = vsub.f32 %v1784_v13, %v2083_v46  ;;  %v625_v41 = vsub.f32 %v1787_v20, %v2082_v51 }
  0xd3   : > { %v1838_v37 = vand.u32 4294901760, %v303_v58  ;;  %v1840_v30 = vand.u32 4294901760, %v302_v1  ;;  %509 = vmatpush1.msra.mxu0 %v1802_v36  ;;  %v261_v42 = vpop.permute.xlu1 %260  ;;  %v259_v33 = vpop.permute.xlu0 %258  ;;  %v2087_v34 = vand.u32 4294901760, %v1817_v63  ;;  %v2086_v35 = vand.u32 4294901760, %v1820_v0 }
  0xd4   : > { %609 = vmatprep.subr.mxu1 %v608_v25  ;;  %v614_v52 = vand.u32 4294901760, %v613_v32  ;;  %v263_v38 = vsel %vm262_vm7, %v259_v33, %v261_v42  ;;  %v264_v26 = vsel %vm262_vm7, %v261_v42, %v259_v33  ;;  %v620_v51 = vand.u32 4294901760, %v619_v21 }
  0xd5   : > { %v1850_v46 = vsub.f32 %v303_v58, %v1838_v37  ;;  %v1853_v40 = vsub.f32 %v302_v1, %v1840_v30  ;;  %v278_v39 = vmul.f32 %v271_v55, %v264_v26  ;;  %v279_v25 = vmul.f32 %v275_v56, %v263_v38  ;;  %511 = vmatprep.subr.mxu0 %v1838_v37 }
  0xd6   : > { %615 = vmatpush1.msra.mxu1 %v614_v52  ;;  %513 = vmatpush1.msra.mxu0 %v1840_v30  ;;  %v626_v32 = vand.u32 4294901760, %v625_v41  ;;  %v643_v58 = vsub.f32 %v1817_v63, %v2087_v34  ;;  %v649_v1 = vsub.f32 %v1820_v0, %v2086_v35  ;;  %v558_v26 = vsub.f32 %v1781_v12, %v557_v53 }
  0xd7   : > { %v1872_v43 = vand.u32 4294901760, %v279_v25  ;;  %v1874_v38 = vand.u32 4294901760, %v278_v39  ;;  %621 = vmatprep.subr.mxu1 %v620_v51  ;;  %v236_v55 = vpop.permute.xlu1 %235  ;;  %v234_v56 = vpop.permute.xlu0 %233  ;;  %v654_v21 = vand.u32 4294901760, %v1850_v46  ;;  %v660_v41 = vand.u32 4294901760, %v1853_v40 }
  0xd8   : > { %627 = vmatpush1.msra.mxu1 %v626_v32  ;;  %v240_v42 = vsel %vm239_vm8, %v234_v56, %v236_v55  ;;  %v241_v33 = vsel %vm239_vm8, %v236_v55, %v234_v56  ;;  %v644_v52 = vand.u32 4294901760, %v643_v58  ;;  %v650_v35 = vand.u32 4294901760, %v649_v1 }
  0xd9   : > { %v1883_v34 = vsub.f32 %v279_v25, %v1872_v43  ;;  %v1886_v51 = vsub.f32 %v278_v39, %v1874_v38  ;;  %633 = vmatprep.subr.mxu1 %v632_v4  ;;  %v254_v32 = vmul.f32 %v247_v5, %v241_v33  ;;  %v255_v16 = vmul.f32 %v251_v18, %v240_v42 }
  0xda   : > { %639 = vmatpush1.msra.mxu1 %v638_v3  ;;  %515 = vmatprep.subr.mxu0 %v1872_v43  ;;  %v655_v39 = vsub.f32 %v1850_v46, %v654_v21  ;;  %v661_v44 = vsub.f32 %v1853_v40, %v660_v41  ;;  %v559_v18 = vand.u32 4294901760, %v558_v26 }
  0xdb   : > { %v1905_v4 = vand.u32 4294901760, %v255_v16  ;;  %v1907_v10 = vand.u32 4294901760, %v254_v32  ;;  %645 = vmatprep.subr.mxu1 %v644_v52  ;;  %517 = vmatpush1.msra.mxu0 %v1874_v38  ;;  %v666_v8 = vand.u32 4294901760, %v1883_v34  ;;  %v672_v54 = vand.u32 4294901760, %v1886_v51 }
  0xdc   : > { %651 = vmatpush1.msra.mxu1 %v650_v35  ;;  %v656_v57 = vand.u32 4294901760, %v655_v39  ;;  %v662_v5 = vand.u32 4294901760, %v661_v44 }
  0xdd   : > { %v1913_v3 = vsub.f32 %v255_v16, %v1905_v4  ;;  %v1916_v25 = vsub.f32 %v254_v32, %v1907_v10  ;;  %519 = vmatprep.subr.mxu0 %v1905_v4  ;;  %v667_v58 = vsub.f32 %v1883_v34, %v666_v8  ;;  %v673_v1 = vsub.f32 %v1886_v51, %v672_v54 }
  0xde   : > { %657 = vmatprep.subr.mxu1 %v656_v57  ;;  %521 = vmatpush1.msra.mxu0 %v1907_v10 }
  0xdf   : > { %663 = vmatpush1.msra.mxu1 %v662_v5  ;;  %744 = vmatprep.subr.mxu0 %v1724_v9  ;;  %v668_v35 = vand.u32 4294901760, %v667_v58  ;;  %v674_v26 = vand.u32 4294901760, %v673_v1  ;;  %v678_v55 = vand.u32 4294901760, %v1913_v3  ;;  %v684_v56 = vand.u32 4294901760, %v1916_v25 }
  0xe0   : > { %560 = vmatmul.mubr.f32.vlgmr.msra.gmra.mxu0 %v559_v18  ;;  %v2099_v9 = vand.u32 4294901760, %v1758_v47 }
  0xe1   : > { %747 = vmatpush1.msra.mxu0 %v1727_v11  ;;  %669 = vmatprep.subr.mxu1 %v668_v35  ;;  %v679_v42 = vsub.f32 %v1913_v3, %v678_v55  ;;  %v685_v33 = vsub.f32 %v1916_v25, %v684_v56  ;;  %v2100_v11 = vand.u32 4294901760, %v1761_v48 }
  0xe2   : > { %750 = vmatprep.subr.mxu0 %v1718_v6  ;;  %675 = vmatpush1.msra.mxu1 %v674_v26  ;;  %v2101_v6 = vand.u32 4294901760, %v1784_v13 }
  0xe3   : > { %753 = vmatpush1.msra.mxu0 %v1721_v7  ;;  %v680_v52 = vand.u32 4294901760, %v679_v42  ;;  %v686_v32 = vand.u32 4294901760, %v685_v33  ;;  %828 = vmatprep.mubr.f32.mxu0 %v1464_v2  ;;  %v2102_v7 = vand.u32 4294901760, %v1787_v20 }
  0xe4   : > { %756 = vmatprep.subr.mxu0 %v1758_v47 }
  0xe5   : > { %759 = vmatpush1.msra.mxu0 %v1761_v48  ;;  %681 = vmatprep.subr.mxu1 %v680_v52 }
  0xe6   : > { %762 = vmatprep.subr.mxu0 %v1784_v13  ;;  %687 = vmatpush1.msra.mxu1 %v686_v32 }
  0xe7   : > { %765 = vmatpush1.msra.mxu0 %v1787_v20  ;;  %722 = vmatmul.mubr.f32.vlgmr.msra.gmra.mxu1 %v1734_v19 }
  0xe8   : > { %768 = vmatprep.subr.mxu0 %v1633_v17  ;;  %852 = vmatprep.subr.mxu1 %v1706_v61 }
  0xe9   : > { %771 = vmatpush1.msra.mxu0 %v1640_v22  ;;  %854 = vmatpush1.msra.mxu1 %v1708_v62 }
  0xea   : > { %774 = vmatprep.subr.mxu0 %v1817_v63  ;;  %856 = vmatprep.subr.mxu1 %v1702_v59 }
  0xeb   : > { %777 = vmatpush1.msra.mxu0 %v1820_v0  ;;  %858 = vmatpush1.msra.mxu1 %v1704_v60 }
  0xec   : > { %780 = vmatprep.subr.mxu0 %v1850_v46  ;;  %860 = vmatprep.subr.mxu1 %v1741_v29 }
  0xed   : > { %783 = vmatpush1.msra.mxu0 %v1853_v40  ;;  %862 = vmatpush1.msra.mxu1 %v1743_v31 }
  0xee   : > { %786 = vmatprep.subr.mxu0 %v1883_v34  ;;  %864 = vmatprep.subr.mxu1 %v1770_v49 }
  0xef   : > { %789 = vmatpush1.msra.mxu0 %v1886_v51  ;;  %866 = vmatpush1.msra.mxu1 %v1772_v50 }
  0xf0   : > { %792 = vmatprep.subr.mxu0 %v1913_v3  ;;  %868 = vmatprep.subr.mxu1 %v1626_v14 }
  0xf1   : > { %795 = vmatpush1.msra.mxu0 %v1916_v25  ;;  %870 = vmatpush1.msra.mxu1 %v1628_v15 }
  0xf2   : > { %831 = vmatmul.mubr.f32.vlgmr.msra.gmra.mxu0 %v1781_v12  ;;  %872 = vmatprep.subr.mxu1 %v1800_v45 }
  0xf3   : > { %946 = vmatprep.subr.mxu0 %v582_v23  ;;  %874 = vmatpush1.msra.mxu1 %v1802_v36  ;;  %v2103_v23 = vand.u32 4294901760, %v1633_v17 }
  0xf4   : > { %950 = vmatpush1.msra.mxu0 %v588_v24  ;;  %876 = vmatprep.subr.mxu1 %v1838_v37  ;;  %v2104_v24 = vand.u32 4294901760, %v1640_v22 }
  0xf5   : > { %954 = vmatprep.subr.mxu0 %v594_v27  ;;  %878 = vmatpush1.msra.mxu1 %v1840_v30  ;;  %v2105_v27 = vand.u32 4294901760, %v1817_v63 }
  0xf6   : > { %958 = vmatpush1.msra.mxu0 %v600_v28  ;;  %880 = vmatprep.subr.mxu1 %v1872_v43  ;;  %v2106_v28 = vand.u32 4294901760, %v1820_v0 }
  0xf7   : > { %962 = vmatprep.subr.mxu0 %v2099_v9  ;;  %882 = vmatpush1.msra.mxu1 %v1874_v38 }
  0xf8   : > { %966 = vmatpush1.msra.mxu0 %v2100_v11  ;;  %884 = vmatprep.subr.mxu1 %v1905_v4 }
  0xf9   : > { %970 = vmatprep.subr.mxu0 %v2101_v6  ;;  %886 = vmatpush1.msra.mxu1 %v1907_v10 }
  0xfa   : > { %919 = vmatprep.mubr.f32.mxu1 %v1464_v2  ;;  %974 = vmatpush1.msra.mxu0 %v2102_v7 }
  0xfb   : > { %923 = vmatmul.mubr.f32.vlgmr.msra.gmra.mxu1 %v557_v53  ;;  %978 = vmatprep.subr.mxu0 %v2103_v23 }
  0xfc   : > { %1070 = vmatprep.subr.mxu1 %v1706_v61  ;;  %982 = vmatpush1.msra.mxu0 %v2104_v24 }
  0xfd   : > { %1072 = vmatpush1.msra.mxu1 %v1708_v62  ;;  %986 = vmatprep.subr.mxu0 %v2105_v27 }
  0xfe   : > { %1074 = vmatprep.subr.mxu1 %v1702_v59  ;;  %990 = vmatpush1.msra.mxu0 %v2106_v28 }
  0xff   : > { %1076 = vmatpush1.msra.mxu1 %v1704_v60  ;;  %994 = vmatprep.subr.mxu0 %v654_v21 }
 0x100   : > { %1078 = vmatprep.subr.mxu1 %v1741_v29  ;;  %998 = vmatpush1.msra.mxu0 %v660_v41 }
 0x101   : > { %1080 = vmatpush1.msra.mxu1 %v1743_v31  ;;  %1002 = vmatprep.subr.mxu0 %v666_v8 }
 0x102   : > { %1082 = vmatprep.subr.mxu1 %v1770_v49  ;;  %1006 = vmatpush1.msra.mxu0 %v672_v54 }
 0x103   : > { %1084 = vmatpush1.msra.mxu1 %v1772_v50  ;;  %1010 = vmatprep.subr.mxu0 %v678_v55 }
 0x104   : > { %1086 = vmatprep.subr.mxu1 %v1626_v14  ;;  %1014 = vmatpush1.msra.mxu0 %v684_v56 }
 0x105   : > { %1047 = vmatprep.mubr.f32.mxu0 %v1464_v2  ;;  %1088 = vmatpush1.msra.mxu1 %v1628_v15  ;;  %v466_v15 = vpop.permute.xlu0 %465 }
 0x106   : > { %1049 = vmatmul.mubr.f32.vlgmr.msra.gmra.mxu0 %v1734_v19  ;;  %1090 = vmatprep.subr.mxu1 %v1800_v45 }
 0x107   : > { %1092 = vmatpush1.msra.mxu1 %v1802_v36  ;;  %1137 = vmatprep.mubr.f32.mxu1 %v1464_v2 }
 0x108   : > { %1094 = vmatprep.subr.mxu1 %v1838_v37 }
 0x109   : > { %1096 = vmatpush1.msra.mxu1 %v1840_v30 }
 0x10a   : > { %1098 = vmatprep.subr.mxu1 %v1872_v43 }
 0x10b   : > { %1100 = vmatpush1.msra.mxu1 %v1874_v38 }
 0x10c   : > { %1102 = vmatprep.subr.mxu1 %v1905_v4 }
 0x10d   : > { %1104 = vmatpush1.msra.mxu1 %v1907_v10 }
 0x10e   : > { %1139 = vmatmul.mubr.f32.vlgmr.msra.gmra.mxu1 %v1734_v19 }
 0x1a0   : > { %v561_v14 = vpop.f32.mrf.mxu0 }
 0x1a1   : > { %v562_v2 = vadd.f32 %v561_v14, %v466_v15 }
 0x1a2   : > { %v563_v17 = vpop.f32.mrf.mxu0 }
 0x1a3   : > { %v564_v61 = vadd.f32 %v563_v17, %v466_v15 }
 0x1a7   : > { %v723_v22 = vpop.f32.mrf.mxu1 }
 0x1a8   : > { %v724_v31 = vadd.f32 %v723_v22, %v562_v2 }
 0x1a9   : > { %v725_v60 = vpop.f32.mrf.mxu1 }
 0x1aa   : > { %v726_v48 = vadd.f32 %v725_v60, %v564_v61 }
 0x1b2   : > { %v832_v59 = vpop.f32.mrf.mxu0 }
 0x1b3   : > { %v833_v49 = vadd.f32 %v832_v59, %v724_v31 }
 0x1b4   : > { %v834_v62 = vpop.f32.mrf.mxu0 }
 0x1b5   : > { %v835_v12 = vadd.f32 %v834_v62, %v726_v48 }
 0x1bb   : > { %v924_v29 = vpop.f32.mrf.mxu1 }
 0x1bc   : > { %v925_v13 = vadd.f32 %v924_v29, %v833_v49 }
 0x1bd   : > { %v926_v50 = vpop.f32.mrf.mxu1 }
 0x1be   : > { %v927_v20 = vadd.f32 %v926_v50, %v835_v12 }
 0x1c6   : > { %v1050_v47 = vpop.f32.mrf.mxu0 }
 0x1c7   : > { %v1051_v40 = vadd.f32 %v1050_v47, %v925_v13 }
 0x1c8   : > { %v1052_v19 = vpop.f32.mrf.mxu0 }
 0x1c9   : > { %v1053_v36 = vadd.f32 %v1052_v19, %v927_v20 }
 0x1ce   : > { %v1140_v45 = vpop.f32.mrf.mxu1 }
 0x1cf   : > { %v1141_v46 = vadd.f32 %v1140_v45, %v1051_v40 }
 0x1d0   : > { %v1142_v53 = vpop.f32.mrf.mxu1 }
 0x1d1   : > { %1145 = vst [vmem:[%s228_s5] sm:$0xff] %v1141_v46  ;;  %v1143_v63 = vadd.f32 %v1142_v53, %v1053_v36 }
 0x1d3   : > { %1146 = vst [vmem:[%s228_s5 + $0x8] sm:$0xff] %v1143_v63 }
 0x1d4   : > { %1397 = shalt.err (!%p1394_p0)
}
 0x1d5   : > { %s1398_s7 = scalar_lea.hbm %s1160_s26, 256  ;;  %s1402_s12 = scalar_lea.hbm %s2075_s4, 512 }
 0x1d6   : > { %p1399_p5 = scmp.ne.s32.totalorder %s1160_s26, %s1398_s7  ;;  %p1403_p1 = scmp.lt.s32.totalorder %s1160_s26, %s2075_s4 }
 0x1d7   : > { %p1404_p4 = scmp.lt.s32.totalorder %s1402_s12, %s1398_s7 }
 0x1d8   : > { %p1400_p9 = pnand %p1399_p5, %p2107_p3 }
 0x1d9   : > { %p1405_p6 = por %p1404_p4, %p1403_p1 }
 0x1da   : > { %p1401_p12 = pneg %p1400_p9 }
 0x1dc   : > { %p1406_p8 = pnand %p1405_p6, %p1401_p12 }
 0x1de   : > { %1409 = shalt.err (!%p1406_p8)
}
 0x1df   : > { %1266 = dma.vmem_to_hbm [thread:$0]  (%p2107_p3), %s1163_s6, 256, %s1160_s26, %s1148_s28  }
 0x1e0 PF: > { %s1174_s14 = sand.u32 1, %s1440_s15   ;;  %p2108_p11 = scmp.ne.s32.totalorder %s2089_s22, 0 }
 0x1e1   : > { %p2109_p7 = scmp.ge.s32.totalorder %s1452_s18, 2  ;;  %s1175_s20 = scalar_lea.sflag [#allocation5], %s1174_s14 }
 0x1e3   : > { %p1277_p10 = pnand %p2109_p7, %p2108_p11 }
 0x1e5   : > { %p1278_p2 = pneg %p1277_p10 }
 0x1e7   : > { %1435 = dma.done.wait (%p1278_p2), %s1175_s20, 256  }
 0x1e8   : > { %1437 = vsyncadd (%p1278_p2), %s1175_s20, 4294967040  ;;  %p18_p13 = scmp.ge.s32.totalorder %s1548_s27, 4   ;;  %s2110_s15 = smov %s1444_s16 }
 0x1e9   : > { %s2111_s16 = smov %s1448_s17  ;;  %s2112_s17 = smov %s1565_s9 }
 0x1ea   : > { %s2113_s18 = smov %s1548_s27  ;;  %20 = sbr.rel (!%p18_p13) target bundleno = 6 (0x6), region = 93 }
 0x1ef   :  { %1180 = vsyncpa [#allocation4], 1 }
 0x1f0   :  { %1182 = vsyncpa [#allocation4 + $0x1], 1 }
 0x1f1   :  { %1183 = vsyncpa [#allocation7], 1 }
 0x1f2   :  { %1184 = vsyncpa [#allocation5], 1 }
 0x1f3   :  { %1186 = vsyncpa [#allocation5 + $0x1], 1 }

</bundles_post_ra>
